<compile_context>
chip_gen: v7x
topology: tpu7x:2x2x1
jax: 0.10.0
libtpu: 0.0.40
codegen_flags: <defaults>
</compile_context>

<pallas_src>
import functools

import jax
import jax.numpy as jnp
from jax.experimental import pallas as pl
from jax.experimental.pallas import tpu as pltpu


def _round_up(x, m):
    return ((x + m - 1) // m) * m


def _actor_kernel(obs_ref, w1_ref, b1_ref, w2_ref, b2_ref, w3_ref, b3_ref,
                  *out_refs, with_logprob: bool):
    probs_ref = out_refs[0]
    logp_ref = out_refs[1] if with_logprob else None

    x = obs_ref[...]

    # Hidden layer 1: Linear + ReLU  (bf16 operands -> MXU, f32 accumulate)
    h1 = jnp.maximum(
        jnp.dot(x.astype(w1_ref.dtype), w1_ref[...],
                preferred_element_type=jnp.float32) + b1_ref[...], 0.0)
    # Hidden layer 2: Linear + ReLU
    h2 = jnp.maximum(
        jnp.dot(h1.astype(w2_ref.dtype), w2_ref[...],
                preferred_element_type=jnp.float32) + b2_ref[...], 0.0)
    # Output layer: Linear (Identity) -> logits (128-lane padded; pad bias=-1e9)
    logits = jnp.dot(h2.astype(w3_ref.dtype), w3_ref[...],
                     preferred_element_type=jnp.float32) + b3_ref[...]

    # Categorical(logits): probs = softmax, logp = log_softmax
    m = jnp.max(logits, axis=-1, keepdims=True)
    z = logits - m
    e = jnp.exp(z)
    s = jnp.sum(e, axis=-1, keepdims=True)
    r = pl.reciprocal(s, approx=True)      # EUP vrcp (otherwise-idle slot)
    r = r * (2.0 - s * r)                  # one Newton step -> ~f32 accuracy
    probs_ref[...] = e * r                 # lane-dense (TB, 128k) store
    if with_logprob:
        logp_ref[...] = z - jnp.log(s)


def prepare_params(params, weight_dtype=jnp.bfloat16):
    """One-time param prep: pad hidden/output dims to 128 lanes, cast weights.

    Hidden padding uses zeros (exact no-op through ReLU); the output padding
    uses a -1e9 bias so padded logits contribute ~0 to softmax.  Biases stay
    f32.  Call once and reuse across forward calls.
    """
    w1, b1, w2, b2, w3, b3 = params
    act_dim = w3.shape[1]
    h1, h2 = w1.shape[1], w2.shape[1]
    h1p = max(128, _round_up(h1, 128))
    h2p = max(128, _round_up(h2, 128))
    n_out = max(128, _round_up(act_dim, 128))

    w1p = jnp.pad(w1, ((0, 0), (0, h1p - h1))).astype(weight_dtype)
    b1p = jnp.pad(b1, ((0, 0), (0, h1p - h1))).astype(jnp.float32)
    w2p = jnp.pad(w2, ((0, h1p - h1), (0, h2p - h2))).astype(weight_dtype)
    b2p = jnp.pad(b2, ((0, 0), (0, h2p - h2))).astype(jnp.float32)
    w3p = jnp.pad(w3, ((0, h2p - h2), (0, n_out - act_dim))).astype(weight_dtype)
    b3p = jnp.pad(b3, ((0, 0), (0, n_out - act_dim)),
                  constant_values=-1e9).astype(jnp.float32)
    return {"layers": (w1p, b1p, w2p, b2p, w3p, b3p), "act_dim": act_dim}


def mlp_actor_forward(obs, prepared, deterministic=False, with_logprob=True,
                      rng=None):
    """Mirrors MLPActor.forward: returns (pi_action[B] int32,
    probs[B, act_dim] f32, logp_pi[B, act_dim] f32 or None)."""
    w1, b1, w2, b2, w3, b3 = prepared["layers"]
    act_dim = prepared["act_dim"]
    B, obs_dim = obs.shape
    n_out = w3.shape[1]

    # Batch tiling: obs/outputs stream per grid step, weights stay resident.
    # >=2 grid steps once B>=16 (v7x megacore); TB capped at 512 for large B.
    if B <= 8:
        TB = _round_up(max(B, 1), 8)
    elif B <= 1024:
        TB = _round_up(-(-B // 2), 8)
    else:
        TB = 512
    Bp = _round_up(B, TB)
    if Bp != B:
        obs = jnp.pad(obs, ((0, Bp - B), (0, 0)))
    grid = (Bp // TB,)

    row_spec = lambda n: pl.BlockSpec((TB, n), lambda i: (i, 0))
    resident = lambda a: pl.BlockSpec(a.shape, lambda i: (0, 0))

    in_specs = [row_spec(obs_dim),
                resident(w1), resident(b1),
                resident(w2), resident(b2),
                resident(w3), resident(b3)]
    out_specs = [row_spec(n_out)]
    out_shape = [jax.ShapeDtypeStruct((Bp, n_out), jnp.float32)]
    if with_logprob:
        out_specs.append(row_spec(n_out))
        out_shape.append(jax.ShapeDtypeStruct((Bp, n_out), jnp.float32))

    # VMEM budget: double-buffered tiles + resident weights + intermediates.
    tile_in = TB * obs_dim * obs.dtype.itemsize
    tile_out = len(out_shape) * TB * n_out * 4
    weight_bytes = sum(int(a.size) * a.dtype.itemsize
                       for a in (w1, b1, w2, b2, w3, b3))
    interm = TB * (w1.shape[1] + w2.shape[1] + n_out) * 4
    needed = 2 * (tile_in + tile_out + weight_bytes) + 4 * interm
    vmem_limit_bytes = int(min(max(needed, 32 * 2**20), 64 * 2**20))

    kernel = functools.partial(_actor_kernel, with_logprob=with_logprob)

    outs = pl.pallas_call(
        kernel,
        grid_spec=pltpu.PrefetchScalarGridSpec(
            num_scalar_prefetch=0,
            grid=grid,
            in_specs=in_specs,
            out_specs=out_specs,
        ),
        out_shape=out_shape,
        compiler_params=pltpu.CompilerParams(
            dimension_semantics=("parallel",),
            vmem_limit_bytes=vmem_limit_bytes),
    )(obs, w1, b1, w2, b2, w3, b3)

    probs = outs[0][:B, :act_dim]
    logp_pi = outs[1][:B, :act_dim] if with_logprob else None

    if deterministic:
        # argmax(probs) in the wrapper (no in-kernel int32 / XLU work needed).
        pi_action = jnp.argmax(probs, axis=-1).astype(jnp.int32)
    else:
        # Categorical(logits).sample() in the wrapper: the in-kernel hardware
        # PRNG (pltpu.prng_seed) has no interpret/CPU lowering, and the draw
        # over (B, act_dim) is negligible next to the MLP itself.
        if rng is None:
            rng = jax.random.PRNGKey(0)
        lg = logp_pi if logp_pi is not None else jnp.log(probs)
        pi_action = jax.random.categorical(rng, lg, axis=-1).astype(jnp.int32)
    return pi_action, probs, logp_pi


def init_params(key, obs_dim, hidden_sizes, act_dim):
    """Deterministic init mimicking nn.Linear (uniform +-1/sqrt(fan_in))."""
    sizes = [obs_dim] + list(hidden_sizes) + [act_dim]
    params = []
    for j in range(len(sizes) - 1):
        key, kw, kb = jax.random.split(key, 3)
        fan_in, fan_out = sizes[j], sizes[j + 1]
        bound = 1.0 / jnp.sqrt(float(fan_in))
        w = jax.random.uniform(kw, (fan_in, fan_out), jnp.float32, -bound, bound)
        b = jax.random.uniform(kb, (1, fan_out), jnp.float32, -bound, bound)
        params += [w, b]
    return tuple(params)


if __name__ == "__main__":
    obs_dim, act_dim = 16, 8
    hidden_sizes = (32, 32)
    batch = 2

    key = jax.random.PRNGKey(0)
    k_obs, k_par, k_samp = jax.random.split(key, 3)
    obs = jax.random.normal(k_obs, (batch, obs_dim), jnp.float32)
    raw_params = init_params(k_par, obs_dim, hidden_sizes, act_dim)
    prepared = prepare_params(raw_params, weight_dtype=jnp.bfloat16)

    # deterministic path (argmax action, with log-probs)
    pi_action, probs, logp_pi = mlp_actor_forward(
        obs, prepared, deterministic=True, with_logprob=True)
    jax.block_until_ready((pi_action, probs, logp_pi))

    # pure-JAX reference using the same bf16-weight / f32-accumulate math
    w1, b1, w2, b2, w3, b3 = raw_params
    bf = jnp.bfloat16
    h = jnp.maximum(jnp.dot(obs.astype(bf), w1.astype(bf),
                            preferred_element_type=jnp.float32) + b1, 0.0)
    h = jnp.maximum(jnp.dot(h.astype(bf), w2.astype(bf),
                            preferred_element_type=jnp.float32) + b2, 0.0)
    logits = jnp.dot(h.astype(bf), w3.astype(bf),
                     preferred_element_type=jnp.float32) + b3
    ref_probs = jax.nn.softmax(logits, axis=-1)
    ref_logp = jax.nn.log_softmax(logits, axis=-1)
    ref_act = jnp.argmax(ref_probs, axis=-1).astype(jnp.int32)

    assert probs.shape == (batch, act_dim)
    assert logp_pi.shape == (batch, act_dim)
    assert jnp.allclose(probs, ref_probs, atol=2e-3)
    assert jnp.allclose(logp_pi, ref_logp, atol=2e-3)
    assert jnp.allclose(jnp.sum(probs, axis=-1), 1.0, atol=1e-3)
    assert jnp.all(pi_action == ref_act)

    # stochastic path (Categorical.sample), with_logprob=False branch
    pi_s, probs_s, logp_s = mlp_actor_forward(
        obs, prepared, deterministic=False, with_logprob=False, rng=k_samp)
    jax.block_until_ready((pi_s, probs_s))
    assert logp_s is None
    assert probs_s.shape == (batch, act_dim)
    assert jnp.allclose(probs_s, ref_probs, atol=2e-3)
    assert jnp.all((pi_s >= 0) & (pi_s < act_dim))

    print("KERNEL_OK")
</pallas_src>

<mosaic_0001>
module attributes {stable_mosaic.version = 11 : i64} {
  func.func @_actor_kernel(%arg0: i32, %arg1: memref<8x16xf32, #tpu.memory_space<vmem>>, %arg2: memref<16x128xbf16, #tpu.memory_space<vmem>>, %arg3: memref<1x128xf32, #tpu.memory_space<vmem>>, %arg4: memref<128x128xbf16, #tpu.memory_space<vmem>>, %arg5: memref<1x128xf32, #tpu.memory_space<vmem>>, %arg6: memref<128x128xbf16, #tpu.memory_space<vmem>>, %arg7: memref<1x128xf32, #tpu.memory_space<vmem>>, %arg8: memref<8x128xf32, #tpu.memory_space<vmem>>, %arg9: memref<8x128xf32, #tpu.memory_space<vmem>>) attributes {dimension_semantics = [#tpu.dimension_semantics<parallel>], iteration_bounds = array<i64: 1>, scalar_prefetch = 0 : i64, scratch_operands = 0 : i64, tpu.core_type = #tpu.core_type<tc>, window_params = [{transform_indices = @transform_0, window_bounds = array<i64: 8, 16>}, {pipeline_mode = #tpu.pipeline_mode<synchronous>, transform_indices = @transform_1, window_bounds = array<i64: 16, 128>}, {pipeline_mode = #tpu.pipeline_mode<synchronous>, transform_indices = @transform_2, window_bounds = array<i64: 1, 128>}, {pipeline_mode = #tpu.pipeline_mode<synchronous>, transform_indices = @transform_3, window_bounds = array<i64: 128, 128>}, {pipeline_mode = #tpu.pipeline_mode<synchronous>, transform_indices = @transform_4, window_bounds = array<i64: 1, 128>}, {pipeline_mode = #tpu.pipeline_mode<synchronous>, transform_indices = @transform_5, window_bounds = array<i64: 128, 128>}, {pipeline_mode = #tpu.pipeline_mode<synchronous>, transform_indices = @transform_6, window_bounds = array<i64: 1, 128>}, {transform_indices = @transform_7, window_bounds = array<i64: 8, 128>}, {transform_indices = @transform_8, window_bounds = array<i64: 8, 128>}]} {
    %c0 = arith.constant 0 : index
    %c0_0 = arith.constant 0 : index
    %0 = vector.load %arg1[%c0, %c0_0] : memref<8x16xf32, #tpu.memory_space<vmem>>, vector<8x16xf32>
    %1 = arith.truncf %0 : vector<8x16xf32> to vector<8x16xbf16>
    %c0_1 = arith.constant 0 : index
    %c0_2 = arith.constant 0 : index
    %2 = vector.load %arg2[%c0_1, %c0_2] : memref<16x128xbf16, #tpu.memory_space<vmem>>, vector<16x128xbf16>
    %cst = arith.constant dense<0.000000e+00> : vector<8x128xf32>
    %3 = tpu.matmul %1, %2, %cst {dimension_numbers = #tpu.dot_dimension_numbers<[1], [0], [0], [1], [0, 0, 1, 1], [], []>} : vector<8x16xbf16>, vector<16x128xbf16>, vector<8x128xf32> -> vector<8x128xf32>
    %c0_3 = arith.constant 0 : index
    %c0_4 = arith.constant 0 : index
    %4 = vector.load %arg3[%c0_3, %c0_4] : memref<1x128xf32, #tpu.memory_space<vmem>>, vector<1x128xf32>
    %5 = vector.broadcast %4 : vector<1x128xf32> to vector<8x128xf32>
    %6 = arith.addf %3, %5 : vector<8x128xf32>
    %cst_5 = arith.constant 0.000000e+00 : f32
    %7 = vector.broadcast %cst_5 : f32 to vector<8x128xf32>
    %8 = arith.maximumf %6, %7 : vector<8x128xf32>
    %9 = arith.truncf %8 : vector<8x128xf32> to vector<8x128xbf16>
    %c0_6 = arith.constant 0 : index
    %c0_7 = arith.constant 0 : index
    %10 = vector.load %arg4[%c0_6, %c0_7] : memref<128x128xbf16, #tpu.memory_space<vmem>>, vector<128x128xbf16>
    %cst_8 = arith.constant dense<0.000000e+00> : vector<8x128xf32>
    %11 = tpu.matmul %9, %10, %cst_8 {dimension_numbers = #tpu.dot_dimension_numbers<[1], [0], [0], [1], [0, 0, 1, 1], [], []>} : vector<8x128xbf16>, vector<128x128xbf16>, vector<8x128xf32> -> vector<8x128xf32>
    %c0_9 = arith.constant 0 : index
    %c0_10 = arith.constant 0 : index
    %12 = vector.load %arg5[%c0_9, %c0_10] : memref<1x128xf32, #tpu.memory_space<vmem>>, vector<1x128xf32>
    %13 = vector.broadcast %12 : vector<1x128xf32> to vector<8x128xf32>
    %14 = arith.addf %11, %13 : vector<8x128xf32>
    %cst_11 = arith.constant 0.000000e+00 : f32
    %15 = vector.broadcast %cst_11 : f32 to vector<8x128xf32>
    %16 = arith.maximumf %14, %15 : vector<8x128xf32>
    %17 = arith.truncf %16 : vector<8x128xf32> to vector<8x128xbf16>
    %c0_12 = arith.constant 0 : index
    %c0_13 = arith.constant 0 : index
    %18 = vector.load %arg6[%c0_12, %c0_13] : memref<128x128xbf16, #tpu.memory_space<vmem>>, vector<128x128xbf16>
    %cst_14 = arith.constant dense<0.000000e+00> : vector<8x128xf32>
    %19 = tpu.matmul %17, %18, %cst_14 {dimension_numbers = #tpu.dot_dimension_numbers<[1], [0], [0], [1], [0, 0, 1, 1], [], []>} : vector<8x128xbf16>, vector<128x128xbf16>, vector<8x128xf32> -> vector<8x128xf32>
    %c0_15 = arith.constant 0 : index
    %c0_16 = arith.constant 0 : index
    %20 = vector.load %arg7[%c0_15, %c0_16] : memref<1x128xf32, #tpu.memory_space<vmem>>, vector<1x128xf32>
    %21 = vector.broadcast %20 : vector<1x128xf32> to vector<8x128xf32>
    %22 = arith.addf %19, %21 : vector<8x128xf32>
    %cst_17 = arith.constant dense<0xFF800000> : vector<8xf32>
    %23 = vector.multi_reduction <maximumf>, %22, %cst_17 [1] : vector<8x128xf32> to vector<8xf32>
    %24 = vector.shape_cast %23 : vector<8xf32> to vector<8x1xf32>
    %25 = vector.broadcast %24 : vector<8x1xf32> to vector<8x128xf32>
    %26 = arith.subf %22, %25 : vector<8x128xf32>
    %27 = math.exp %26 : vector<8x128xf32>
    %cst_18 = arith.constant dense<0.000000e+00> : vector<8xf32>
    %28 = vector.multi_reduction <add>, %27, %cst_18 [1] : vector<8x128xf32> to vector<8xf32>
    %29 = vector.shape_cast %28 : vector<8xf32> to vector<8x1xf32>
    %30 = tpu.reciprocal %29 {approx = true} : vector<8x1xf32> -> vector<8x1xf32>
    %31 = arith.mulf %29, %30 : vector<8x1xf32>
    %cst_19 = arith.constant 2.000000e+00 : f32
    %32 = vector.broadcast %cst_19 : f32 to vector<8x1xf32>
    %33 = arith.subf %32, %31 : vector<8x1xf32>
    %34 = arith.mulf %30, %33 : vector<8x1xf32>
    %35 = vector.broadcast %34 : vector<8x1xf32> to vector<8x128xf32>
    %36 = arith.mulf %27, %35 : vector<8x128xf32>
    %c0_20 = arith.constant 0 : index
    %c0_21 = arith.constant 0 : index
    %37 = vector.load %arg8[%c0_20, %c0_21] : memref<8x128xf32, #tpu.memory_space<vmem>>, vector<8x128xf32>
    tpu.vector_store %arg8[%c0_20, %c0_21], %36 {strides = array<i32>} : memref<8x128xf32, #tpu.memory_space<vmem>>, vector<8x128xf32>,
    %38 = math.log %29 : vector<8x1xf32>
    %39 = vector.broadcast %38 : vector<8x1xf32> to vector<8x128xf32>
    %40 = arith.subf %26, %39 : vector<8x128xf32>
    %c0_22 = arith.constant 0 : index
    %c0_23 = arith.constant 0 : index
    %41 = vector.load %arg9[%c0_22, %c0_23] : memref<8x128xf32, #tpu.memory_space<vmem>>, vector<8x128xf32>
    tpu.vector_store %arg9[%c0_22, %c0_23], %40 {strides = array<i32>} : memref<8x128xf32, #tpu.memory_space<vmem>>, vector<8x128xf32>,
    return
  }
  func.func @transform_0(%arg0: i32) -> (i32, i32) {
    %c0_i32 = arith.constant 0 : i32
    %c0_i32_0 = arith.constant 0 : i32
    return %arg0, %c0_i32 : i32, i32
  }
  func.func @transform_1(%arg0: i32) -> (i32, i32) {
    %c0_i32 = arith.constant 0 : i32
    %c0_i32_0 = arith.constant 0 : i32
    %c0_i32_1 = arith.constant 0 : i32
    return %c0_i32, %c0_i32_0 : i32, i32
  }
  func.func @transform_2(%arg0: i32) -> (i32, i32) {
    %c0_i32 = arith.constant 0 : i32
    %c0_i32_0 = arith.constant 0 : i32
    %c0_i32_1 = arith.constant 0 : i32
    return %c0_i32, %c0_i32_0 : i32, i32
  }
  func.func @transform_3(%arg0: i32) -> (i32, i32) {
    %c0_i32 = arith.constant 0 : i32
    %c0_i32_0 = arith.constant 0 : i32
    %c0_i32_1 = arith.constant 0 : i32
    return %c0_i32, %c0_i32_0 : i32, i32
  }
  func.func @transform_4(%arg0: i32) -> (i32, i32) {
    %c0_i32 = arith.constant 0 : i32
    %c0_i32_0 = arith.constant 0 : i32
    %c0_i32_1 = arith.constant 0 : i32
    return %c0_i32, %c0_i32_0 : i32, i32
  }
  func.func @transform_5(%arg0: i32) -> (i32, i32) {
    %c0_i32 = arith.constant 0 : i32
    %c0_i32_0 = arith.constant 0 : i32
    %c0_i32_1 = arith.constant 0 : i32
    return %c0_i32, %c0_i32_0 : i32, i32
  }
  func.func @transform_6(%arg0: i32) -> (i32, i32) {
    %c0_i32 = arith.constant 0 : i32
    %c0_i32_0 = arith.constant 0 : i32
    %c0_i32_1 = arith.constant 0 : i32
    return %c0_i32, %c0_i32_0 : i32, i32
  }
  func.func @transform_7(%arg0: i32) -> (i32, i32) {
    %c0_i32 = arith.constant 0 : i32
    %c0_i32_0 = arith.constant 0 : i32
    return %arg0, %c0_i32 : i32, i32
  }
  func.func @transform_8(%arg0: i32) -> (i32, i32) {
    %c0_i32 = arith.constant 0 : i32
    %c0_i32_0 = arith.constant 0 : i32
    return %arg0, %c0_i32 : i32, i32
  }
}

</mosaic_0001>

<bundles_post_ra>
// kernel: tpu_custom_call.1
= control target key start
LH: loop header
LB: loop body
LE: loop exit
PB: predicated region body
PF: predicated region fallthrough
CT: control target
= control target key end

     0   :  { %14 = vsyncpa [#allocation3], 0  ;;  %s853_s0 = inlined_call_operand.hbm [shape: f32[8,16], index: 0, kind: input, shape index: {}]   ;;  %s854_s1 = inlined_call_operand.hbm [shape: bf16[16,128], index: 1, kind: input, shape index: {}]   ;;  %s855_s2 = inlined_call_operand.vmem [shape: f32[1,128], index: 2, kind: input, shape index: {}]   ;;  %s856_s3 = inlined_call_operand.hbm [shape: bf16[128,128], index: 3, kind: input, shape index: {}]   ;;  %s857_s4 = inlined_call_operand.vmem [shape: f32[1,128], index: 4, kind: input, shape index: {}]   ;;  %s858_s5 = inlined_call_operand.hbm [shape: bf16[128,128], index: 5, kind: input, shape index: {}]   ;;  %s859_s6 = inlined_call_operand.vmem [shape: f32[1,128], index: 6, kind: input, shape index: {}]   ;;  %s860_s7 = inlined_call_operand.hbm [shape: f32[8,128], index: 7, kind: output, shape index: {0}]   ;;  %s861_s8 = inlined_call_operand.hbm [shape: f32[8,128], index: 8, kind: output, shape index: {1}]  }
   0x1   :  { %15 = vsyncpa [#allocation6], 0 }
   0x2   :  { %16 = vsyncpa [#allocation9], 0 }
   0x3   :  { %17 = vsyncpa [#allocation4], 0 }
   0x4   :  { %18 = vsyncpa [#allocation12], 0  ;;  %s681_s27 = smov [#allocation5]   ;;  %s539_s9 = scalar_lea.hbm %s854_s1, 128 }
   0x5   :  { %s34_s28 = sshll.u32 %s681_s27, 4  ;;  %p540_p0 = scmp.ne.s32.totalorder %s854_s1, %s539_s9  ;;  %s35_s28 = int_to_ptr.vmem [resolvable:$true] %s34_s28 }
   0x6   :  { %p543_p1 = scmp.lt.u32.totalorder %s539_s9, %s854_s1 }
   0x8   :  { %p545_p2 = pnand %p543_p1, %p540_p0 }
   0xa   :  { %548 = shalt.err (!%p545_p2)
}
   0xb   :  { %s549_s14 = scalar_lea.vmem %s35_s28, 128  ;;  %p554_p4 = scmp.lt.s32.totalorder %s35_s28, %s35_s28 }
   0xc   :  { %p550_p3 = scmp.ne.s32.totalorder %s35_s28, %s549_s14  ;;  %p555_p5 = scmp.lt.s32.totalorder %s549_s14, %s549_s14 }
   0xe   :  { %p556_p6 = por %p555_p5, %p554_p4 }
  0x10   :  { %p557_p7 = pnand %p556_p6, %p550_p3 }
  0x12   :  { %560 = shalt.err (!%p557_p7)
}
  0x13   :  { %s682_s15 = smov 64   ;;  %s683_s16 = smov 4  }
  0x14   :  { %40 = dma.hbm_to_vmem [thread:$0]  %s854_s1, 128, %s35_s28, [#allocation6], %s682_s15, %s682_s15, %s683_s16  }
  0x15   :  { %s684_s19 = smov [#allocation2]   ;;  %s685_s21 = smov [#allocation7]  }
  0x16   :  { %s25_s20 = sshll.u32 %s684_s19, 4  ;;  %s48_s22 = sshll.u32 %s685_s21, 4  ;;  %s26_s20 = int_to_ptr.vmem [resolvable:$true] %s25_s20  ;;  %s49_s22 = int_to_ptr.vmem [resolvable:$true] %s48_s22 }
  0x17   :  { %s561_s25 = scalar_lea.hbm %s853_s0, 128 }
  0x18   :  { %p562_p8 = scmp.ne.s32.totalorder %s853_s0, %s561_s25  ;;  %p565_p9 = scmp.lt.u32.totalorder %s561_s25, %s853_s0 }
  0x1a   :  { %p567_p10 = pnand %p565_p9, %p562_p8 }
  0x1c   :  { %570 = shalt.err (!%p567_p10)
}
  0x1d   :  { %s571_s1 = scalar_lea.vmem %s26_s20, 128  ;;  %p576_p12 = scmp.lt.s32.totalorder %s26_s20, %s26_s20 }
  0x1e   :  { %p572_p11 = scmp.ne.s32.totalorder %s26_s20, %s571_s1  ;;  %p577_p13 = scmp.lt.s32.totalorder %s571_s1, %s571_s1 }
  0x20   :  { %p578_p0 = por %p577_p13, %p576_p12 }
  0x22   :  { %p579_p1 = pnand %p578_p0, %p572_p11 }
  0x24   :  { %582 = shalt.err (!%p579_p1)
}
  0x25   :  { %28 = dma.hbm_to_vmem [thread:$0]  %s853_s0, 128, %s26_s20, [#allocation3]  }
  0x26   :  { %s583_s12 = scalar_lea.hbm %s856_s3, 1024 }
  0x27   :  { %p584_p2 = scmp.ne.s32.totalorder %s856_s3, %s583_s12  ;;  %p587_p3 = scmp.lt.u32.totalorder %s583_s12, %s856_s3 }
  0x29   :  { %p589_p4 = pnand %p587_p3, %p584_p2 }
  0x2b   :  { %592 = shalt.err (!%p589_p4)
}
  0x2c   :  { %s593_s19 = scalar_lea.vmem %s49_s22, 1024  ;;  %p598_p6 = scmp.lt.s32.totalorder %s49_s22, %s49_s22 }
  0x2d   :  { %p594_p5 = scmp.ne.s32.totalorder %s49_s22, %s593_s19  ;;  %p599_p7 = scmp.lt.s32.totalorder %s593_s19, %s593_s19 }
  0x2f   :  { %p600_p8 = por %p599_p7, %p598_p6 }
  0x31   :  { %p601_p9 = pnand %p600_p8, %p594_p5 }
  0x33   :  { %604 = shalt.err (!%p601_p9)
}
  0x34   :  { %54 = dma.hbm_to_vmem [thread:$0]  %s856_s3, 1024, %s49_s22, [#allocation6], %s682_s15, %s682_s15, %s683_s16  }
  0x35   :  { %s686_s21 = smov [#allocation8]   ;;  %s605_s26 = scalar_lea.hbm %s858_s5, 1024 }
  0x36   :  { %s62_s23 = sshll.u32 %s686_s21, 4  ;;  %p606_p10 = scmp.ne.s32.totalorder %s858_s5, %s605_s26  ;;  %s63_s23 = int_to_ptr.vmem [resolvable:$true] %s62_s23 }
  0x37   :  { %p609_p11 = scmp.lt.u32.totalorder %s605_s26, %s858_s5 }
  0x39   :  { %p611_p12 = pnand %p609_p11, %p606_p10 }
  0x3b   :  { %614 = shalt.err (!%p611_p12)
}
  0x3c   :  { %s615_s28 = scalar_lea.vmem %s63_s23, 1024  ;;  %p620_p0 = scmp.lt.s32.totalorder %s63_s23, %s63_s23 }
  0x3d   :  { %p616_p13 = scmp.ne.s32.totalorder %s63_s23, %s615_s28  ;;  %p621_p1 = scmp.lt.s32.totalorder %s615_s28, %s615_s28 }
  0x3f   :  { %p622_p2 = por %p621_p1, %p620_p0 }
  0x41   :  { %p623_p3 = pnand %p622_p2, %p616_p13 }
  0x43   :  { %626 = shalt.err (!%p623_p3)
}
  0x44   :  { %68 = dma.hbm_to_vmem [thread:$0]  %s858_s5, 1024, %s63_s23, [#allocation9], %s682_s15, %s682_s15, %s683_s16  }
  0x45   :  { %671 = dma.done.wait [#allocation3], 128  }
  0x46   :  { %672 = vsyncadd [#allocation3], 4294967168 }
  0x47   :  { %673 = dma.done.wait [#allocation6], 1152  }
  0x48   :  { %674 = vsyncadd [#allocation6], 4294966144 }
  0x49   :  { %675 = dma.done.wait [#allocation9], 1024  }
  0x4a   :  { %676 = vsyncadd [#allocation9], 4294966272  ;;  %v687_v0 = vmov 0.0   ;;  %vm688_vm0 = vmmov 0   ;;  %v516_v1 = vld [vmem:[#allocation5] sm:$0xff]   ;;  %v84_v2 = vld [vmem:[#allocation2] sm:$0xff] }
  0x4b   :  { %460 = vmatprep.subr.bf16.mxu0 %v687_v0  ;;  %462 = vmatprep.mubr.msk.bf16.mxu0 %vm688_vm0, %v687_v0  ;;  %v85_v3 = vpack.c.bf16 %v84_v2, %v84_v2  ;;  %vm101_vm1 = vcmask 130048   ;;  %v517_v4 = vld [vmem:[#allocation7] sm:$0xff]   ;;  %v518_v5 = vld [vmem:[#allocation7 + $0x8] sm:$0xff]   ;;  %v519_v6 = vld [vmem:[#allocation7 + $0x10] sm:$0xff]   ;;  %s690_s11 = smov [#allocation10]  }
  0x4c   :  { %466 = vmatprep.subr.bf16.mxu1 %v687_v0  ;;  %482 = vmatprep.mubr.msk.bf16.mxu1 %vm688_vm0, %v687_v0  ;;  %v520_v7 = vld [vmem:[#allocation7 + $0x18] sm:$0xff]   ;;  %v521_v8 = vld [vmem:[#allocation7 + $0x20] sm:$0xff]   ;;  %v522_v9 = vld [vmem:[#allocation7 + $0x28] sm:$0xff]   ;;  %s394_s12 = sshll.u32 %s690_s11, 4  ;;  %s822_s12 = int_to_ptr.vmem [resolvable:$true] %s394_s12 }
  0x4d   :  { %461 = vmatpush3.bf16.msra.mxu0 %v516_v1  ;;  %467 = vmatpush3.bf16.msra.mxu1 %v517_v4  ;;  %v523_v10 = vld [vmem:[#allocation7 + $0x30] sm:$0xff]   ;;  %v524_v11 = vld [vmem:[#allocation7 + $0x38] sm:$0xff]   ;;  %v525_v12 = vld [vmem:[#allocation8] sm:$0xff]  }
  0x4e   :  { %486 = vmatprep.subr.bf16.mxu0 %v687_v0  ;;  %468 = vmatprep.subr.bf16.mxu1 %v687_v0  ;;  %v526_v13 = vld [vmem:[#allocation8 + $0x8] sm:$0xff]   ;;  %v527_v14 = vld [vmem:[#allocation8 + $0x10] sm:$0xff]   ;;  %v528_v15 = vld [vmem:[#allocation8 + $0x18] sm:$0xff]  }
  0x4f   :  { %v529_v16 = vld [vmem:[#allocation8 + $0x20] sm:$0xff]   ;;  %v530_v17 = vld [vmem:[#allocation8 + $0x28] sm:$0xff]   ;;  %v419_v18 = vld [vmem:[%s855_s2] ss:$0 sm:$0xff] }
  0x50   :  { %463 = vmatmul.mubr.msk.bf16.vlgmr.msra.gmra.mrb[0].mxu0 %vm101_vm1, %v85_v3  ;;  %v531_v26 = vld [vmem:[#allocation8 + $0x30] sm:$0xff]   ;;  %v532_v27 = vld [vmem:[#allocation8 + $0x38] sm:$0xff]  }
  0x51   :  { %502 = vmatprep.mubr.msk.bf16.mxu0 %vm688_vm0, %v687_v0  ;;  %469 = vmatpush3.bf16.msra.mxu1 %v518_v5  ;;  %v422_v28 = vld [vmem:[%s857_s4] ss:$0 sm:$0xff]  ;;  %s689_s4 = smov [#allocation11]  }
  0x52   :  { %470 = vmatprep.subr.bf16.mxu1 %v687_v0  ;;  %487 = vmatpush3.bf16.msra.mxu0 %v525_v12  ;;  %v431_v36 = vld [vmem:[%s859_s6] ss:$0 sm:$0xff]  ;;  %s404_s6 = sshll.u32 %s689_s4, 4  ;;  %s405_s6 = int_to_ptr.vmem [resolvable:$true] %s404_s6 }
  0x53   :  { %488 = vmatprep.subr.bf16.mxu0 %v687_v0  ;;  %s627_s13 = scalar_lea.vmem %s405_s6, 128  ;;  %p632_p5 = scmp.lt.s32.totalorder %s405_s6, %s405_s6 }
  0x54   :  { %p628_p4 = scmp.ne.s32.totalorder %s405_s6, %s627_s13  ;;  %p633_p6 = scmp.lt.s32.totalorder %s627_s13, %s627_s13 }
  0x55   :  { %471 = vmatpush3.bf16.msra.mxu1 %v519_v6 }
  0x56   :  { %472 = vmatprep.subr.bf16.mxu1 %v687_v0  ;;  %489 = vmatpush3.bf16.msra.mxu0 %v526_v13  ;;  %p634_p7 = por %p633_p6, %p632_p5 }
  0x57   :  { %490 = vmatprep.subr.bf16.mxu0 %v687_v0 }
  0x58   :  { %p635_p8 = pnand %p634_p7, %p628_p4 }
  0x59   :  { %473 = vmatpush3.bf16.msra.mxu1 %v520_v7 }
  0x5a   :  { %474 = vmatprep.subr.bf16.mxu1 %v687_v0  ;;  %491 = vmatpush3.bf16.msra.mxu0 %v527_v14 }
  0x5b   :  { %492 = vmatprep.subr.bf16.mxu0 %v687_v0 }
  0x5d   :  { %475 = vmatpush3.bf16.msra.mxu1 %v521_v8 }
  0x5e   :  { %476 = vmatprep.subr.bf16.mxu1 %v687_v0  ;;  %493 = vmatpush3.bf16.msra.mxu0 %v528_v15 }
  0x5f   :  { %494 = vmatprep.subr.bf16.mxu0 %v687_v0 }
  0x61   :  { %477 = vmatpush3.bf16.msra.mxu1 %v522_v9 }
  0x62   :  { %478 = vmatprep.subr.bf16.mxu1 %v687_v0  ;;  %495 = vmatpush3.bf16.msra.mxu0 %v529_v16 }
  0x63   :  { %496 = vmatprep.subr.bf16.mxu0 %v687_v0 }
  0x65   :  { %479 = vmatpush3.bf16.msra.mxu1 %v523_v10 }
  0x66   :  { %480 = vmatprep.subr.bf16.mxu1 %v687_v0  ;;  %497 = vmatpush3.bf16.msra.mxu0 %v530_v17 }
  0x67   :  { %498 = vmatprep.subr.bf16.mxu0 %v687_v0 }
  0x69   :  { %481 = vmatpush3.bf16.msra.mxu1 %v524_v11 }
  0x6a   :  { %499 = vmatpush3.bf16.msra.mxu0 %v531_v26 }
  0x6b   :  { %500 = vmatprep.subr.bf16.mxu0 %v687_v0 }
  0x6e   :  { %501 = vmatpush3.bf16.msra.mxu0 %v532_v27 }
 0x123   :  { %v139_v19 = vpop.f32.mrb[0].mxu0 }
 0x124   :  { %v140_v20 = vadd.f32 %v419_v18, %v139_v19  ;;  %v464_v21 = vpop.f32.mrb[1].mxu0 }
 0x125   :  { %v142_v22 = vpop.f32.mrb[2].mxu0 }
 0x126   :  { %v145_v23 = vmax.f32 %v140_v20, 0.0  ;;  %v465_v24 = vpop.f32.mrb[3].mxu0 }
 0x128   :  { %v146_v25 = vpack.c.bf16 %v145_v23, %v145_v23 }
 0x12a   :  { %483 = vmatmul.mubr.bf16.vlgmr.msra.gmra.mrb[0].mxu1 %v146_v25 }
 0x1fd   :  { %v252_v29 = vpop.f32.mrb[0].mxu1 }
 0x1fe   :  { %v253_v30 = vadd.f32 %v422_v28, %v252_v29  ;;  %v484_v31 = vpop.f32.mrb[1].mxu1 }
 0x1ff   :  { %v255_v32 = vpop.f32.mrb[2].mxu1 }
 0x200   :  { %v258_v33 = vmax.f32 %v253_v30, 0.0  ;;  %v485_v34 = vpop.f32.mrb[3].mxu1 }
 0x202   :  { %v259_v35 = vpack.c.bf16 %v258_v33, %v258_v33 }
 0x204   :  { %503 = vmatmul.mubr.bf16.vlgmr.msra.gmra.mrb[4].mxu0 %v259_v35 }
 0x2d7   :  { %v365_v37 = vpop.f32.mrb[4].mxu0 }
 0x2d8   :  { %v366_v38 = vadd.f32 %v431_v36, %v365_v37  ;;  %v504_v39 = vpop.f32.mrb[5].mxu0 }
 0x2d9   :  { %v368_v40 = vpop.f32.mrb[6].mxu0 }
 0x2da   :  { %371 = vmax.xlane.f32.xlu0 %v366_v38  ;;  %v505_v41 = vpop.f32.mrb[7].mxu0 }
 0x367   :  { %v372_v42 = vpop.xlane.xlu0 %371 }
 0x368   :  { %v373_v43 = vsub.f32 %v366_v38, %v372_v42 }
 0x36a   :  { %v374_v44 = vmul.f32 1.442695, %v373_v43 }
 0x36c   :  { %533 = vpow2.f32 %v374_v44 }
 0x376   :  { %v534_v45 = vpop.eup %533 }
 0x377   :  { %376 = vadd.xlane.f32.xlu0 %v534_v45 }
 0x404   :  { %v377_v46 = vpop.xlane.xlu0 %376 }
 0x405   :  { %535 = vrcp.f32 %v377_v46 }
 0x406   :  { %537 = vlog2.f32 %v377_v46 }
 0x40f   :  { %v536_v47 = vpop.eup %535 }
 0x410   :  { %v538_v48 = vpop.eup %537  ;;  %v379_v49 = vmul.f32 %v536_v47, %v377_v46 }
 0x411   :  { %v385_v50 = vmul.f32 0.6931472, %v538_v48 }
 0x412   :  { %v380_v51 = vsub.f32 2.0, %v379_v49 }
 0x413   :  { %v386_v52 = vsub.f32 %v373_v43, %v385_v50 }
 0x414   :  { %v381_v53 = vmul.f32 %v536_v47, %v380_v51 }
 0x415   :  { %387 = vst [vmem:[#allocation11] sm:$0xff] %v386_v52 }
 0x416   :  { %v382_v54 = vmul.f32 %v534_v45, %v381_v53 }
 0x417   :  { %638 = shalt.err (!%p635_p8)
}
 0x418   :  { %s639_s18 = scalar_lea.hbm %s861_s8, 128 }
 0x419   :  { %p640_p9 = scmp.ne.s32.totalorder %s861_s8, %s639_s18  ;;  %p643_p10 = scmp.lt.u32.totalorder %s639_s18, %s861_s8 }
 0x41b   :  { %p645_p11 = pnand %p643_p10, %p640_p9 }
 0x41d   :  { %648 = shalt.err (!%p645_p11)
}
 0x41e   :  { %407 = dma.vmem_to_hbm [thread:$0]  %s405_s6, 128, %s861_s8, [#allocation12]   ;;  %383 = vst [vmem:[#allocation10] sm:$0xff] %v382_v54 }
 0x41f   :  { %s649_s25 = scalar_lea.vmem %s822_s12, 128  ;;  %p654_p13 = scmp.lt.s32.totalorder %s822_s12, %s822_s12 }
 0x420   :  { %p650_p12 = scmp.ne.s32.totalorder %s822_s12, %s649_s25  ;;  %p655_p0 = scmp.lt.s32.totalorder %s649_s25, %s649_s25 }
 0x422   :  { %p656_p1 = por %p655_p0, %p654_p13 }
 0x424   :  { %p657_p2 = pnand %p656_p1, %p650_p12 }
 0x426   :  { %660 = shalt.err (!%p657_p2)
}
 0x427   :  { %s661_s29 = scalar_lea.hbm %s860_s7, 128 }
 0x428   :  { %p662_p3 = scmp.ne.s32.totalorder %s860_s7, %s661_s29  ;;  %p665_p4 = scmp.lt.u32.totalorder %s661_s29, %s860_s7 }
 0x42a   :  { %p667_p5 = pnand %p665_p4, %p662_p3 }
 0x42c   :  { %670 = shalt.err (!%p667_p5)
}
 0x42d   :  { %397 = dma.vmem_to_hbm [thread:$0]  %s822_s12, 128, %s860_s7, [#allocation4]  }
 0x42e   :  { %677 = dma.done.wait [#allocation4], 128  }
 0x42f   :  { %678 = vsyncadd [#allocation4], 4294967168 }
 0x430   :  { %679 = dma.done.wait [#allocation12], 128  }
 0x431   :  { %680 = vsyncadd [#allocation12], 4294967168 }
 0x432   :  { %414 = vsyncpa [#allocation3], 1 }
 0x433   :  { %415 = vsyncpa [#allocation6], 1 }
 0x434   :  { %416 = vsyncpa [#allocation9], 1 }
 0x435   :  { %417 = vsyncpa [#allocation4], 1 }
 0x436   :  { %418 = vsyncpa [#allocation12], 1 }

</bundles_post_ra>
